<compile_context>
chip_gen: v5e
topology: v5e:2x2
jax: 0.10.0
libtpu: 0.0.40
codegen_flags: <defaults>
</compile_context>

<pallas_src>
import jax
import jax.numpy as jnp
from jax.experimental import pallas as pl
from jax.experimental.pallas import tpu as pltpu

_TARGET_BLOCK_BYTES = 4 * 1024 * 1024      # ~4 MiB blocks: in+out double-buffered ~16 MiB
_MIN_MULTI_STEP_BYTES = 2 * 1024 * 1024    # below this: one full-array block, one grid step
_MAX_SINGLE_BLOCK_BYTES = 6 * 1024 * 1024  # safety cap so 2x(in)+2x(out) stays < 32 MiB scoped VMEM


def _identity_kernel(unc_ref, out_ref):
    # Pure pass-through of the selected uncertainty tensor.
    out_ref[...] = unc_ref[...]


def _largest_row_tile(rows: int, row_bytes: int, target_bytes: int, sub_align: int) -> int:
    """Largest divisor of `rows` whose block stays under `target_bytes`.

    When the row-tile is the second-to-last block dim (2-D arrays), it must be
    a multiple of the sublane packing (`sub_align`) unless it spans all rows.
    """
    cap = max(1, min(rows, target_bytes // max(row_bytes, 1)))
    for d in range(cap, 0, -1):
        if rows % d == 0 and (d == rows or sub_align == 1 or d % sub_align == 0):
            return d
    return rows


def _pallas_identity(unc: jax.Array) -> jax.Array:
    """Identity copy through a Pallas kernel (test / framework hook only).

    Note: this always costs a full HBM read + write of the tensor; the
    production path in `uncertainty_forward` returns the array directly.
    """
    if unc.size == 0:
        return unc

    x = unc
    orig_shape = x.shape
    if x.ndim < 2:
        # Promote scalars / 1-D so the last dim sits on lanes.
        x = x.reshape(1, -1)

    itemsize = jnp.dtype(x.dtype).itemsize
    total_bytes = x.size * itemsize
    rows = x.shape[0]
    row_bytes = (x.size // rows) * itemsize

    if total_bytes <= _MIN_MULTI_STEP_BYTES:
        # Small tensor: one full-array block, one grid step — strictly cheaper
        # than splitting tiny blocks across grid steps / TensorCores.
        row_tile = rows
    else:
        # Only tiling the leading axis; for 2-D arrays that axis is the
        # sublane dim of the block, so keep it packing-aligned.
        sub_align = 8 * max(1, 4 // itemsize) if x.ndim == 2 else 1
        row_tile = _largest_row_tile(rows, row_bytes, _TARGET_BLOCK_BYTES, sub_align)

    block_bytes = row_tile * row_bytes
    if block_bytes > _MAX_SINGLE_BLOCK_BYTES:
        # Cannot tile this tensor safely within every generation's VMEM
        # (worst case v7x). The op is an identity, so the kernel-free path is
        # exact — just return the array.
        return unc

    grid = (rows // row_tile,)
    block = (row_tile,) + x.shape[1:]
    nrest = x.ndim - 1
    index_map = lambda i: (i,) + (0,) * nrest
    semantics = ("parallel",) if grid[0] > 1 else ("arbitrary",)

    out = pl.pallas_call(
        _identity_kernel,
        out_shape=jax.ShapeDtypeStruct(x.shape, x.dtype),
        grid=grid,
        in_specs=[pl.BlockSpec(block, index_map)],
        out_specs=pl.BlockSpec(block, index_map),
        compiler_params=pltpu.CompilerParams(dimension_semantics=semantics),
    )(x)
    return out.reshape(orig_shape)


def uncertainty_forward(model_output: dict, use_pallas: bool = False) -> jax.Array:
    """JAX equivalent of Uncertainty.forward.

    Default path performs the dict lookup only (no kernel) — this matches the
    PyTorch semantics exactly and is the fastest option on v5e/v6e/v7x.
    """
    unc = model_output["potential_energy_uncertainty"]
    if not use_pallas:
        # Production path: no copy, no kernel, no fusion barrier.
        return unc
    # Optional framework hook that routes through a Pallas identity kernel.
    return _pallas_identity(unc)


if __name__ == "__main__":
    key = jax.random.PRNGKey(0)
    k1, k2, k3, k4 = jax.random.split(key, 4)

    batch = 8
    model_output = {
        "potential_energy": jax.random.normal(k1, (batch, 1), dtype=jnp.float32),
        "potential_energy_uncertainty": jax.random.uniform(
            k2, (batch, 1), dtype=jnp.float32
        ),
    }
    expected = model_output["potential_energy_uncertainty"]

    # 1) Default (kernel-free) forward — the recommended / production path.
    out = uncertainty_forward(model_output)
    jax.block_until_ready(out)
    assert out.shape == expected.shape and out.dtype == expected.dtype
    assert bool(jnp.all(out == expected))

    # 2) Pallas hook on the tiny (batch, 1) tensor: single full-array block.
    out_p = uncertainty_forward(model_output, use_pallas=True)
    jax.block_until_ready(out_p)
    assert out_p.shape == expected.shape and out_p.dtype == expected.dtype
    assert bool(jnp.all(out_p == expected))

    # 3) Pallas hook on a 1-D tensor (promoted to a lane-dense 2-D block).
    unc_1d = jax.random.uniform(k3, (300,), dtype=jnp.float32)
    out_1d = uncertainty_forward(
        {"potential_energy_uncertainty": unc_1d}, use_pallas=True
    )
    jax.block_until_ready(out_1d)
    assert out_1d.shape == unc_1d.shape and out_1d.dtype == unc_1d.dtype
    assert bool(jnp.all(out_1d == unc_1d))

    # 4) Pallas hook on a tensor large enough to exercise the tiled
    #    (multi-grid-step, ~4 MiB blocks, "parallel") path: 16384x128 f32 = 8 MiB.
    unc_big = jax.random.uniform(k4, (16384, 128), dtype=jnp.float32)
    out_big = uncertainty_forward(
        {"potential_energy_uncertainty": unc_big}, use_pallas=True
    )
    jax.block_until_ready(out_big)
    assert out_big.shape == unc_big.shape and out_big.dtype == unc_big.dtype
    assert bool(jnp.all(out_big == unc_big))

    print("KERNEL_OK")
</pallas_src>

<mosaic_0001>
module attributes {stable_mosaic.version = 11 : i64} {
  func.func @_identity_kernel(%arg0: i32, %arg1: memref<8x1xf32, #tpu.memory_space<vmem>>, %arg2: memref<8x1xf32, #tpu.memory_space<vmem>>) attributes {dimension_semantics = [#tpu.dimension_semantics<arbitrary>], iteration_bounds = array<i64: 1>, scalar_prefetch = 0 : i64, scratch_operands = 0 : i64, tpu.core_type = #tpu.core_type<tc>, window_params = [{transform_indices = @transform_0, window_bounds = array<i64: 8, 1>}, {transform_indices = @transform_1, window_bounds = array<i64: 8, 1>}]} {
    %c0 = arith.constant 0 : index
    %c0_0 = arith.constant 0 : index
    %0 = vector.load %arg1[%c0, %c0_0] : memref<8x1xf32, #tpu.memory_space<vmem>>, vector<8x1xf32>
    %c0_1 = arith.constant 0 : index
    %c0_2 = arith.constant 0 : index
    %1 = vector.load %arg2[%c0_1, %c0_2] : memref<8x1xf32, #tpu.memory_space<vmem>>, vector<8x1xf32>
    tpu.vector_store %arg2[%c0_1, %c0_2], %0 {strides = array<i32>} : memref<8x1xf32, #tpu.memory_space<vmem>>, vector<8x1xf32>,
    return
  }
  func.func @transform_0(%arg0: i32) -> (i32, i32) {
    %c0_i32 = arith.constant 0 : i32
    %c0_i32_0 = arith.constant 0 : i32
    return %arg0, %c0_i32 : i32, i32
  }
  func.func @transform_1(%arg0: i32) -> (i32, i32) {
    %c0_i32 = arith.constant 0 : i32
    %c0_i32_0 = arith.constant 0 : i32
    return %arg0, %c0_i32 : i32, i32
  }
}

</mosaic_0001>

<bundles_post_ra>
// kernel: tpu_custom_call.1
= control target key start
LH: loop header
LB: loop body
LE: loop exit
PB: predicated region body
PF: predicated region fallthrough
CT: control target
= control target key end

     0   :  { %vm9_vm0 = vcmask 7168   ;;  %s31_s0 = inlined_call_operand.vmem [shape: f32[8,1], index: 0, kind: input, shape index: {}]   ;;  %s32_s1 = inlined_call_operand.vmem [shape: f32[8,1], index: 1, kind: output, shape index: {}]  }
   0x1   :  { %v8_v0 = vld [vmem:[%s31_s0] sm:$0xff] }
   0x2   :  { %10 = vst.msk [vmem:[%s32_s1] sm:$0xff] %vm9_vm0, %v8_v0 }

</bundles_post_ra>
